<compile_context>
chip_gen: v7x
topology: tpu7x:2x2x1
jax: 0.10.0
libtpu: 0.0.40
codegen_flags: <defaults>
</compile_context>

<pallas_src>
import functools

import jax
import jax.numpy as jnp
from jax.experimental import pallas as pl
from jax.experimental.pallas import tpu as pltpu


def _sigmoid_temp_kernel(x_ref, o_ref, *, temp, bias):
    # Elementwise hot path: sigmoid(x / temp + bias). All VPU/EUP work; the
    # kernel is HBM-bound, so one exp per element is nowhere near binding.
    x = x_ref[...].astype(jnp.float32)
    z = x * (1.0 / temp) + bias
    o_ref[...] = jax.nn.sigmoid(z).astype(o_ref.dtype)


def _ceil_div(a: int, b: int) -> int:
    return -(-a // b)


def sigmoid_with_temp(x, *, bias: float = 0.0, temp: float = 1.0,
                      target_block_bytes: int = 2 * 1024 * 1024):
    """Applies sigmoid(x / temp + bias) elementwise via a Pallas TPU kernel."""
    orig_shape = x.shape
    orig_dtype = x.dtype
    n = int(x.size)
    itemsize = jnp.dtype(orig_dtype).itemsize

    flat = x.reshape(-1)

    # --- Choose a lane-dense column width that avoids padding when possible.
    cols = None
    for c in (2048, 1024, 512, 256, 128):
        if n % c == 0:
            cols = c
            break
    if cols is None:
        # Awkward size: pad the tail only (minimal extra HBM traffic).
        cols = 512
        pad = (-n) % cols
        flat = jnp.pad(flat, (0, pad))
    rows = flat.shape[0] // cols
    x2d = flat.reshape(rows, cols)

    # --- Row tiling: ~2 MiB blocks, sublane-aligned (multiple of 8) or full.
    bytes_per_row = cols * itemsize
    block_rows = max(1, target_block_bytes // bytes_per_row)
    if block_rows >= rows:
        block_rows = rows  # full-extent block is always layout-legal
    else:
        block_rows = max(8, (block_rows // 8) * 8)
        if block_rows >= rows:
            block_rows = rows

    # --- Give the v7x megacore >= 2 programs when there is enough work.
    if _ceil_div(rows, block_rows) == 1 and rows >= 16:
        half = _ceil_div(rows, 2)
        half = _ceil_div(half, 8) * 8
        if half < rows:
            block_rows = half

    grid = (_ceil_div(rows, block_rows),)

    out2d = pl.pallas_call(
        functools.partial(_sigmoid_temp_kernel, temp=float(temp), bias=float(bias)),
        out_shape=jax.ShapeDtypeStruct((rows, cols), orig_dtype),
        grid_spec=pltpu.PrefetchScalarGridSpec(
            num_scalar_prefetch=0,
            grid=grid,
            in_specs=[pl.BlockSpec((block_rows, cols), lambda i: (i, 0))],
            out_specs=pl.BlockSpec((block_rows, cols), lambda i: (i, 0)),
        ),
        compiler_params=pltpu.CompilerParams(
            dimension_semantics=("parallel",),
        ),
    )(x2d)

    out_flat = out2d.reshape(-1)
    if out_flat.shape[0] != n:
        out_flat = out_flat[:n]
    return out_flat.reshape(orig_shape)


if __name__ == "__main__":
    key = jax.random.PRNGKey(0)
    temp = 0.5
    bias = 0.25

    # Small NCHW input matching the module's usage.
    x = jax.random.normal(key, (2, 4, 16, 16), dtype=jnp.float32)
    out = jax.block_until_ready(sigmoid_with_temp(x, bias=bias, temp=temp))
    ref = jax.nn.sigmoid(x / temp + bias)
    assert out.shape == x.shape and out.dtype == x.dtype
    assert jnp.allclose(out, ref, atol=1e-6, rtol=1e-6)

    # Odd size exercising the (rare) padded fallback path.
    k2 = jax.random.PRNGKey(1)
    x2 = jax.random.normal(k2, (3, 5, 7), dtype=jnp.float32)
    out2 = jax.block_until_ready(sigmoid_with_temp(x2, bias=bias, temp=temp))
    ref2 = jax.nn.sigmoid(x2 / temp + bias)
    assert jnp.allclose(out2, ref2, atol=1e-6, rtol=1e-6)

    # Larger input exercising multi-block grid + megacore split.
    k3 = jax.random.PRNGKey(2)
    x3 = jax.random.normal(k3, (8, 8, 64, 64), dtype=jnp.float32)
    out3 = jax.block_until_ready(sigmoid_with_temp(x3, bias=bias, temp=temp))
    ref3 = jax.nn.sigmoid(x3 / temp + bias)
    assert jnp.allclose(out3, ref3, atol=1e-6, rtol=1e-6)

    print("KERNEL_OK")
</pallas_src>

<mosaic_0001>
module attributes {stable_mosaic.version = 11 : i64} {
  func.func @_sigmoid_temp_kernel(%arg0: i32, %arg1: memref<1x2048xf32, #tpu.memory_space<vmem>>, %arg2: memref<1x2048xf32, #tpu.memory_space<vmem>>) attributes {dimension_semantics = [#tpu.dimension_semantics<parallel>], iteration_bounds = array<i64: 1>, scalar_prefetch = 0 : i64, scratch_operands = 0 : i64, tpu.core_type = #tpu.core_type<tc>, window_params = [{transform_indices = @transform_0, window_bounds = array<i64: 1, 2048>}, {transform_indices = @transform_1, window_bounds = array<i64: 1, 2048>}]} {
    %c0 = arith.constant 0 : index
    %c0_0 = arith.constant 0 : index
    %0 = vector.load %arg1[%c0, %c0_0] : memref<1x2048xf32, #tpu.memory_space<vmem>>, vector<1x2048xf32>
    %cst = arith.constant 2.000000e+00 : f32
    %1 = vector.broadcast %cst : f32 to vector<1x2048xf32>
    %2 = arith.mulf %0, %1 : vector<1x2048xf32>
    %cst_1 = arith.constant 2.500000e-01 : f32
    %3 = vector.broadcast %cst_1 : f32 to vector<1x2048xf32>
    %4 = arith.addf %2, %3 : vector<1x2048xf32>
    %5 = arith.negf %4 : vector<1x2048xf32>
    %6 = math.exp %5 : vector<1x2048xf32>
    %cst_2 = arith.constant 1.000000e+00 : f32
    %7 = vector.broadcast %cst_2 : f32 to vector<1x2048xf32>
    %8 = arith.addf %7, %6 : vector<1x2048xf32>
    %9 = arith.divf %7, %8 : vector<1x2048xf32>
    %c0_3 = arith.constant 0 : index
    %c0_4 = arith.constant 0 : index
    %10 = vector.load %arg2[%c0_3, %c0_4] : memref<1x2048xf32, #tpu.memory_space<vmem>>, vector<1x2048xf32>
    tpu.vector_store %arg2[%c0_3, %c0_4], %9 {strides = array<i32>} : memref<1x2048xf32, #tpu.memory_space<vmem>>, vector<1x2048xf32>,
    return
  }
  func.func @transform_0(%arg0: i32) -> (i32, i32) {
    %c0_i32 = arith.constant 0 : i32
    %c0_i32_0 = arith.constant 0 : i32
    return %arg0, %c0_i32 : i32, i32
  }
  func.func @transform_1(%arg0: i32) -> (i32, i32) {
    %c0_i32 = arith.constant 0 : i32
    %c0_i32_0 = arith.constant 0 : i32
    return %arg0, %c0_i32 : i32, i32
  }
}

</mosaic_0001>

<bundles_post_ra>
// kernel: tpu_custom_call.1
= control target key start
LH: loop header
LB: loop body
LE: loop exit
PB: predicated region body
PF: predicated region fallthrough
CT: control target
= control target key end

     0   :  { %6 = vsyncpa [#allocation3], 0  ;;  %s152_s0 = inlined_call_operand.hbm [shape: f32[1,2048], index: 0, kind: input, shape index: {}]   ;;  %s153_s1 = inlined_call_operand.hbm [shape: f32[1,2048], index: 1, kind: output, shape index: {}]  }
   0x1   :  { %7 = vsyncpa [#allocation4], 0  ;;  %s116_s6 = smov [#allocation2]   ;;  %s68_s10 = scalar_lea.hbm %s152_s0, 256 }
   0x2   :  { %s14_s7 = sshll.u32 %s116_s6, 4  ;;  %p69_p0 = scmp.ne.s32.totalorder %s152_s0, %s68_s10  ;;  %s15_s7 = int_to_ptr.vmem [resolvable:$true] %s14_s7 }
   0x3   :  { %p72_p1 = scmp.lt.u32.totalorder %s68_s10, %s152_s0 }
   0x5   :  { %p74_p2 = pnand %p72_p1, %p69_p0 }
   0x7   :  { %77 = shalt.err (!%p74_p2)
}
   0x8   :  { %s78_s15 = scalar_lea.vmem %s15_s7, 256  ;;  %p83_p4 = scmp.lt.s32.totalorder %s15_s7, %s15_s7 }
   0x9   :  { %p79_p3 = scmp.ne.s32.totalorder %s15_s7, %s78_s15  ;;  %p84_p5 = scmp.lt.s32.totalorder %s78_s15, %s78_s15 }
   0xb   :  { %p85_p6 = por %p84_p5, %p83_p4 }
   0xd   :  { %p86_p7 = pnand %p85_p6, %p79_p3 }
   0xf   :  { %89 = shalt.err (!%p86_p7)
}
  0x10   :  { %17 = dma.hbm_to_vmem [thread:$0]  %s152_s0, 256, %s15_s7, [#allocation3]  }
  0x11   :  { %112 = dma.done.wait [#allocation3], 256  }
  0x12   :  { %113 = vsyncadd [#allocation3], 4294967040  ;;  %v21_v0 = vld [vmem:[#allocation2] sm:$0xff]  ;;  %v22_v1 = vld [vmem:[#allocation2 + $0x8] sm:$0xff]  ;;  %s117_s18 = smov [#allocation5]  }
  0x13   :  { %v23_v2 = vmul.f32 2.0, %v21_v0  ;;  %v24_v3 = vmul.f32 2.0, %v22_v1  ;;  %s47_s0 = sshll.u32 %s117_s18, 4  ;;  %s48_s0 = int_to_ptr.vmem [resolvable:$true] %s47_s0 }
  0x14   :  { %s90_s19 = scalar_lea.vmem %s48_s0, 256  ;;  %p95_p9 = scmp.lt.s32.totalorder %s48_s0, %s48_s0 }
  0x15   :  { %v25_v4 = vadd.f32 0.25, %v23_v2  ;;  %v26_v5 = vadd.f32 0.25, %v24_v3  ;;  %p91_p8 = scmp.ne.s32.totalorder %s48_s0, %s90_s19  ;;  %p96_p10 = scmp.lt.s32.totalorder %s90_s19, %s90_s19 }
  0x17   :  { %v56_v6 = vmul.f32 -1.442695, %v25_v4  ;;  %v57_v7 = vmul.f32 -1.442695, %v26_v5  ;;  %p97_p11 = por %p96_p10, %p95_p9 }
  0x19   :  { %60 = vpow2.f32 %v56_v6  ;;  %p98_p12 = pnand %p97_p11, %p91_p8 }
  0x1a   :  { %62 = vpow2.f32 %v57_v7 }
  0x23   :  { %v61_v8 = vpop.eup %60 }
  0x24   :  { %v63_v9 = vpop.eup %62  ;;  %v33_v10 = vadd.f32 1.0, %v61_v8 }
  0x25   :  { %v34_v11 = vadd.f32 1.0, %v63_v9 }
  0x26   :  { %64 = vrcp.f32 %v33_v10 }
  0x27   :  { %66 = vrcp.f32 %v34_v11 }
  0x30   :  { %v65_v12 = vpop.eup %64 }
  0x31   :  { %v67_v13 = vpop.eup %66  ;;  %39 = vst [vmem:[#allocation5] sm:$0xff] %v65_v12 }
  0x32   :  { %40 = vst [vmem:[#allocation5 + $0x8] sm:$0xff] %v67_v13 }
  0x33   :  { %101 = shalt.err (!%p98_p12)
}
  0x34   :  { %s102_s22 = scalar_lea.hbm %s153_s1, 256 }
  0x35   :  { %p103_p13 = scmp.ne.s32.totalorder %s153_s1, %s102_s22  ;;  %p106_p0 = scmp.lt.u32.totalorder %s102_s22, %s153_s1 }
  0x37   :  { %p108_p1 = pnand %p106_p0, %p103_p13 }
  0x39   :  { %111 = shalt.err (!%p108_p1)
}
  0x3a   :  { %50 = dma.vmem_to_hbm [thread:$0]  %s48_s0, 256, %s153_s1, [#allocation4]  }
  0x3b   :  { %114 = dma.done.wait [#allocation4], 256  }
  0x3c   :  { %115 = vsyncadd [#allocation4], 4294967040 }
  0x3d   :  { %54 = vsyncpa [#allocation3], 1 }
  0x3e   :  { %55 = vsyncpa [#allocation4], 1 }

</bundles_post_ra>
